<compile_context>
chip_gen: v7x
topology: tpu7x:2x2x1
jax: 0.10.0
libtpu: 0.0.40
codegen_flags: <defaults>
</compile_context>

<pallas_src>
import jax
import jax.numpy as jnp
from jax.experimental import pallas as pl
from jax.experimental.pallas import tpu as pltpu


def _round_up(x, m):
    return ((x + m - 1) // m) * m


def _dimred_kernel(x_ref, w_ref, shift_ref, o_ref):
    # x_ref:     (nb, Cin, thw)  activations (channels on sublanes, spatial on lanes)
    # w_ref:     (Cout, Cin)     conv weight with BN scale pre-folded (x dtype)
    # shift_ref: (Cout, 1)       folded BN shift (f32)
    # o_ref:     (nb, Cout, thw)
    w = w_ref[...]
    shift = shift_ref[...]
    nb = x_ref.shape[0]
    for i in range(nb):  # nb is a small static constant (<= 8)
        acc = jnp.dot(w, x_ref[i], preferred_element_type=jnp.float32)
        y = acc + shift                              # BN shift (scale folded into W)
        o_ref[i] = jnp.maximum(y, 0.01 * y).astype(o_ref.dtype)   # LeakyReLU(0.01)


def _choose_tiling(N, Cin, Cout, HW, itemsize):
    """Pick (thw, nb, vmem_limit_bytes) from a per-chip VMEM budget."""
    try:
        vmem_cap = int(pltpu.get_tpu_info().vmem_capacity_bytes)
    except Exception:
        vmem_cap = 64 << 20  # conservative (v7x per-TC physical VMEM)

    hw_pad = _round_up(HW, 128)

    # Budget for the double-buffered activation tiles (input + output): ~1/4 of
    # physical VMEM, leaving room for resident weights + compiler scratch.
    act_budget = max(2 << 20, vmem_cap // 4)
    per_col = 2 * (Cin + Cout) * itemsize                      # dbl-buffered bytes / column
    thw_budget = max(128, (act_budget // per_col) // 128 * 128)
    thw = min(hw_pad, thw_budget, 65536)

    # Pack multiple images per grid step when one image's spatial extent fits in
    # a single tile (small feature maps -> otherwise almost pure per-step overhead).
    nb = 1
    if thw >= hw_pad and N > 1:
        per_img = (Cin + Cout) * thw * itemsize
        nb = max(1, min(N, 8, (act_budget // 2) // max(1, per_img)))

    # Megacore (v7x): keep >= 2 grid blocks when there is meaningful work.
    total_bytes = N * (Cin + Cout) * HW * itemsize
    if total_bytes > (1 << 20):
        if pl.cdiv(N, nb) * pl.cdiv(HW, thw) < 2:
            if N >= 2:
                nb = max(1, min(nb, (N + 1) // 2))
            elif hw_pad >= 256:
                thw = _round_up((HW + 1) // 2, 128)

    act_bytes = 2 * nb * (Cin + Cout) * thw * itemsize
    wgt_bytes = 2 * (Cout * Cin + Cout) * 4
    needed = act_bytes + wgt_bytes
    vmem_limit = int(min(vmem_cap * 7 // 10, max(32 << 20, needed * 2)))
    vmem_limit = max(vmem_limit, needed + (2 << 20))
    return thw, nb, vmem_limit


def dim_reduction(x_nchw, conv_w, bn_gamma, bn_beta, bn_mean, bn_var, eps=1e-5):
    """x_nchw: (N, Cin, H, W); conv_w: (Cout, Cin, 1, 1) as in PyTorch."""
    N, Cin, H, W = x_nchw.shape
    Cout = conv_w.shape[0]
    HW = H * W
    dtype = x_nchw.dtype
    itemsize = jnp.dtype(dtype).itemsize

    # Fold BN (eval-mode running stats + affine) into weight scale + shift, in f32.
    scale = bn_gamma.astype(jnp.float32) / jnp.sqrt(bn_var.astype(jnp.float32) + eps)
    w2d = (conv_w.reshape(Cout, Cin).astype(jnp.float32) * scale[:, None]).astype(dtype)
    shift = (bn_beta.astype(jnp.float32) - bn_mean.astype(jnp.float32) * scale).reshape(Cout, 1)

    # Free reshape, keeps NCHW memory order (spatial contiguous on lanes).
    x3d = x_nchw.reshape(N, Cin, HW)

    thw, nb, vmem_limit = _choose_tiling(N, Cin, Cout, HW, itemsize)
    grid = (pl.cdiv(N, nb), pl.cdiv(HW, thw))

    out3d = pl.pallas_call(
        _dimred_kernel,
        out_shape=jax.ShapeDtypeStruct((N, Cout, HW), dtype),
        grid_spec=pltpu.PrefetchScalarGridSpec(
            num_scalar_prefetch=0,
            grid=grid,
            in_specs=[
                pl.BlockSpec((nb, Cin, thw), lambda b, j: (b, 0, j)),
                pl.BlockSpec((Cout, Cin), lambda b, j: (0, 0)),   # resident (const index)
                pl.BlockSpec((Cout, 1), lambda b, j: (0, 0)),     # resident (const index)
            ],
            out_specs=pl.BlockSpec((nb, Cout, thw), lambda b, j: (b, 0, j)),
        ),
        compiler_params=pltpu.CompilerParams(
            dimension_semantics=("parallel", "parallel"),
            vmem_limit_bytes=vmem_limit),
    )(x3d, w2d, shift)

    return out3d.reshape(N, Cout, H, W)


def _reference(x_nchw, conv_w, gamma, beta, mean, var, eps=1e-5):
    # Pure-JAX reference of the same forward (eval-mode BN + LeakyReLU 0.01).
    w2d = conv_w.reshape(conv_w.shape[0], conv_w.shape[1]).astype(jnp.float32)
    y = jnp.einsum("nchw,oc->nohw", x_nchw.astype(jnp.float32), w2d)
    scale = gamma / jnp.sqrt(var + eps)
    y = y * scale[None, :, None, None] + (beta - mean * scale)[None, :, None, None]
    return jnp.where(y > 0, y, 0.01 * y)


if __name__ == "__main__":
    inplanes, planes = 8, 4
    N, H, W = 2, 16, 16

    key = jax.random.PRNGKey(0)
    k_x, k_w, k_g, k_b, k_m, k_v, k_x2 = jax.random.split(key, 7)

    x = jax.random.normal(k_x, (N, inplanes, H, W), dtype=jnp.float32)
    conv_w = jax.random.normal(k_w, (planes, inplanes, 1, 1), dtype=jnp.float32) * 0.1
    gamma = 1.0 + 0.1 * jax.random.normal(k_g, (planes,), dtype=jnp.float32)
    beta = 0.1 * jax.random.normal(k_b, (planes,), dtype=jnp.float32)
    running_mean = 0.1 * jax.random.normal(k_m, (planes,), dtype=jnp.float32)
    running_var = 1.0 + 0.1 * jax.random.uniform(k_v, (planes,), dtype=jnp.float32)

    out = dim_reduction(x, conv_w, gamma, beta, running_mean, running_var)
    out = jax.block_until_ready(out)
    ref = _reference(x, conv_w, gamma, beta, running_mean, running_var)
    assert out.shape == (N, planes, H, W)
    assert jnp.allclose(out, ref, atol=1e-5, rtol=1e-5), "mismatch vs reference"

    # Ragged-tail check: HW not a multiple of 128 and a different batch size,
    # exercising the masked tail blocks (spatial and batch).
    x2 = jax.random.normal(k_x2, (3, inplanes, 10, 10), dtype=jnp.float32)
    out2 = dim_reduction(x2, conv_w, gamma, beta, running_mean, running_var)
    out2 = jax.block_until_ready(out2)
    ref2 = _reference(x2, conv_w, gamma, beta, running_mean, running_var)
    assert out2.shape == (3, planes, 10, 10)
    assert jnp.allclose(out2, ref2, atol=1e-5, rtol=1e-5), "mismatch vs reference (ragged)"

    print("KERNEL_OK")
</pallas_src>

<mosaic_0001>
module attributes {stable_mosaic.version = 11 : i64} {
  func.func @_dimred_kernel(%arg0: i32, %arg1: i32, %arg2: memref<2x8x256xf32, #tpu.memory_space<vmem>>, %arg3: memref<4x8xf32, #tpu.memory_space<vmem>>, %arg4: memref<4x1xf32, #tpu.memory_space<vmem>>, %arg5: memref<2x4x256xf32, #tpu.memory_space<vmem>>) attributes {dimension_semantics = [#tpu.dimension_semantics<parallel>, #tpu.dimension_semantics<parallel>], iteration_bounds = array<i64: 1, 1>, scalar_prefetch = 0 : i64, scratch_operands = 0 : i64, tpu.core_type = #tpu.core_type<tc>, window_params = [{transform_indices = @transform_0, window_bounds = array<i64: 2, 8, 256>}, {pipeline_mode = #tpu.pipeline_mode<synchronous>, transform_indices = @transform_1, window_bounds = array<i64: 4, 8>}, {pipeline_mode = #tpu.pipeline_mode<synchronous>, transform_indices = @transform_2, window_bounds = array<i64: 4, 1>}, {transform_indices = @transform_3, window_bounds = array<i64: 2, 4, 256>}]} {
    %c0 = arith.constant 0 : index
    %c0_0 = arith.constant 0 : index
    %0 = vector.load %arg3[%c0, %c0_0] : memref<4x8xf32, #tpu.memory_space<vmem>>, vector<4x8xf32>
    %c0_1 = arith.constant 0 : index
    %c0_2 = arith.constant 0 : index
    %1 = vector.load %arg4[%c0_1, %c0_2] : memref<4x1xf32, #tpu.memory_space<vmem>>, vector<4x1xf32>
    %c0_3 = arith.constant 0 : index
    %c0_4 = arith.constant 0 : index
    %c0_5 = arith.constant 0 : index
    %2 = vector.load %arg2[%c0_3, %c0_4, %c0_5] : memref<2x8x256xf32, #tpu.memory_space<vmem>>, vector<1x8x256xf32>
    %3 = vector.shape_cast %2 : vector<1x8x256xf32> to vector<8x256xf32>
    %cst = arith.constant dense<0.000000e+00> : vector<4x256xf32>
    %4 = tpu.matmul %0, %3, %cst {dimension_numbers = #tpu.dot_dimension_numbers<[1], [0], [0], [1], [0, 0, 1, 1], [], []>} : vector<4x8xf32>, vector<8x256xf32>, vector<4x256xf32> -> vector<4x256xf32>
    %5 = vector.broadcast %1 : vector<4x1xf32> to vector<4x256xf32>
    %6 = arith.addf %4, %5 : vector<4x256xf32>
    %cst_6 = arith.constant 0.00999999977 : f32
    %7 = vector.broadcast %cst_6 : f32 to vector<4x256xf32>
    %8 = arith.mulf %7, %6 : vector<4x256xf32>
    %9 = arith.maximumf %6, %8 : vector<4x256xf32>
    %c0_7 = arith.constant 0 : index
    %c0_8 = arith.constant 0 : index
    %c0_9 = arith.constant 0 : index
    %10 = vector.load %arg5[%c0_7, %c0_8, %c0_9] : memref<2x4x256xf32, #tpu.memory_space<vmem>>, vector<1x4x256xf32>
    %11 = vector.shape_cast %10 : vector<1x4x256xf32> to vector<4x256xf32>
    %12 = vector.shape_cast %9 : vector<4x256xf32> to vector<1x4x256xf32>
    tpu.vector_store %arg5[%c0_7, %c0_8, %c0_9], %12 {strides = array<i32>} : memref<2x4x256xf32, #tpu.memory_space<vmem>>, vector<1x4x256xf32>,
    %c1 = arith.constant 1 : index
    %c0_10 = arith.constant 0 : index
    %c0_11 = arith.constant 0 : index
    %13 = vector.load %arg2[%c1, %c0_10, %c0_11] : memref<2x8x256xf32, #tpu.memory_space<vmem>>, vector<1x8x256xf32>
    %14 = vector.shape_cast %13 : vector<1x8x256xf32> to vector<8x256xf32>
    %cst_12 = arith.constant dense<0.000000e+00> : vector<4x256xf32>
    %15 = tpu.matmul %0, %14, %cst_12 {dimension_numbers = #tpu.dot_dimension_numbers<[1], [0], [0], [1], [0, 0, 1, 1], [], []>} : vector<4x8xf32>, vector<8x256xf32>, vector<4x256xf32> -> vector<4x256xf32>
    %16 = vector.broadcast %1 : vector<4x1xf32> to vector<4x256xf32>
    %17 = arith.addf %15, %16 : vector<4x256xf32>
    %cst_13 = arith.constant 0.00999999977 : f32
    %18 = vector.broadcast %cst_13 : f32 to vector<4x256xf32>
    %19 = arith.mulf %18, %17 : vector<4x256xf32>
    %20 = arith.maximumf %17, %19 : vector<4x256xf32>
    %c1_14 = arith.constant 1 : index
    %c0_15 = arith.constant 0 : index
    %c0_16 = arith.constant 0 : index
    %21 = vector.load %arg5[%c1_14, %c0_15, %c0_16] : memref<2x4x256xf32, #tpu.memory_space<vmem>>, vector<1x4x256xf32>
    %22 = vector.shape_cast %21 : vector<1x4x256xf32> to vector<4x256xf32>
    %23 = vector.shape_cast %20 : vector<4x256xf32> to vector<1x4x256xf32>
    tpu.vector_store %arg5[%c1_14, %c0_15, %c0_16], %23 {strides = array<i32>} : memref<2x4x256xf32, #tpu.memory_space<vmem>>, vector<1x4x256xf32>,
    return
  }
  func.func @transform_0(%arg0: i32, %arg1: i32) -> (i32, i32, i32) {
    %c0_i32 = arith.constant 0 : i32
    %c0_i32_0 = arith.constant 0 : i32
    return %arg0, %c0_i32, %arg1 : i32, i32, i32
  }
  func.func @transform_1(%arg0: i32, %arg1: i32) -> (i32, i32) {
    %c0_i32 = arith.constant 0 : i32
    %c0_i32_0 = arith.constant 0 : i32
    %c0_i32_1 = arith.constant 0 : i32
    return %c0_i32, %c0_i32_0 : i32, i32
  }
  func.func @transform_2(%arg0: i32, %arg1: i32) -> (i32, i32) {
    %c0_i32 = arith.constant 0 : i32
    %c0_i32_0 = arith.constant 0 : i32
    %c0_i32_1 = arith.constant 0 : i32
    return %c0_i32, %c0_i32_0 : i32, i32
  }
  func.func @transform_3(%arg0: i32, %arg1: i32) -> (i32, i32, i32) {
    %c0_i32 = arith.constant 0 : i32
    %c0_i32_0 = arith.constant 0 : i32
    return %arg0, %c0_i32, %arg1 : i32, i32, i32
  }
}

</mosaic_0001>

<bundles_post_ra>
// kernel: tpu_custom_call.1
= control target key start
LH: loop header
LB: loop body
LE: loop exit
PB: predicated region body
PF: predicated region fallthrough
CT: control target
= control target key end

     0   :  { %8 = vsyncpa [#allocation3], 0  ;;  %s340_s0 = inlined_call_operand.hbm [shape: f32[2,8,256], index: 0, kind: input, shape index: {}]   ;;  %s341_s1 = inlined_call_operand.vmem [shape: f32[4,8], index: 1, kind: input, shape index: {}]   ;;  %s342_s2 = inlined_call_operand.vmem [shape: f32[4,1], index: 2, kind: input, shape index: {}]   ;;  %s343_s3 = inlined_call_operand.hbm [shape: f32[2,4,256], index: 3, kind: output, shape index: {}]  }
   0x1   :  { %9 = vsyncpa [#allocation4], 0  ;;  %s282_s12 = smov [#allocation2]   ;;  %s234_s16 = scalar_lea.hbm %s340_s0, 512 }
   0x2   :  { %s15_s13 = sshll.u32 %s282_s12, 4  ;;  %p235_p0 = scmp.ne.s32.totalorder %s340_s0, %s234_s16  ;;  %s16_s13 = int_to_ptr.vmem [resolvable:$true] %s15_s13 }
   0x3   :  { %p238_p1 = scmp.lt.u32.totalorder %s234_s16, %s340_s0 }
   0x5   :  { %p240_p2 = pnand %p238_p1, %p235_p0 }
   0x7   :  { %243 = shalt.err (!%p240_p2)
}
   0x8   :  { %s244_s21 = scalar_lea.vmem %s16_s13, 512  ;;  %p249_p4 = scmp.lt.s32.totalorder %s16_s13, %s16_s13 }
   0x9   :  { %p245_p3 = scmp.ne.s32.totalorder %s16_s13, %s244_s21  ;;  %p250_p5 = scmp.lt.s32.totalorder %s244_s21, %s244_s21 }
   0xb   :  { %p251_p6 = por %p250_p5, %p249_p4 }
   0xd   :  { %p252_p7 = pnand %p251_p6, %p245_p3 }
   0xf   :  { %255 = shalt.err (!%p252_p7)
}
  0x10   :  { %s283_s22 = smov 256   ;;  %s284_s23 = smov 16  }
  0x11   :  { %21 = dma.hbm_to_vmem [thread:$0]  %s340_s0, 512, %s16_s13, [#allocation3], %s283_s22, %s283_s22, %s284_s23  }
  0x12   :  { %278 = dma.done.wait [#allocation3], 512  }
  0x13   :  { %279 = vsyncadd [#allocation3], 4294966784  ;;  %v285_v0 = vmov 0.0   ;;  %v286_v1 = vmov 0   ;;  %v32_v2 = vld [vmem:[#allocation2 + $0x8] sm:$0xff]  ;;  %v124_v3 = vld [vmem:[#allocation2 + $0x18] sm:$0xff] }
  0x14   :  { %106 = vmatprep.mubr.f32.mxu0 %v285_v0  ;;  %189 = vmatprep.mubr.f32.mxu1 %v285_v0  ;;  %v31_v4 = vld [vmem:[#allocation2] sm:$0xff]  ;;  %vm38_vm0 = vcmask 64512   ;;  %v123_v5 = vld [vmem:[#allocation2 + $0x10] sm:$0xff] }
  0x15   :  { %233 = vset.pattern.permute.xlu0 %v286_v1  ;;  %42 = vmatprep.subr.mxu0 %v32_v2  ;;  %v29_v6 = vld [vmem:[%s341_s1] sm:$0xf]  ;;  %s287_s1 = smov [#allocation5]  }
  0x16   :  { %125 = vmatprep.subr.mxu1 %v124_v3  ;;  %v30_v7 = vld [vmem:[%s342_s2] sm:$0xf]  ;;  %43 = vmatpush1.msra.mxu0 %v31_v4  ;;  %s211_s2 = sshll.u32 %s287_s1, 4  ;;  %s212_s2 = int_to_ptr.vmem [resolvable:$true] %s211_s2 }
  0x17   :  { %126 = vmatpush1.msra.mxu1 %v123_v5  ;;  %223 = vmatmul.mubr.msk.f32.vlgmr.msra.gmra.mrb[0].mxu0 %vm38_vm0, %v29_v6  ;;  %s256_s29 = scalar_lea.vmem %s212_s2, 256  ;;  %p261_p9 = scmp.lt.s32.totalorder %s212_s2, %s212_s2 }
  0x18   :  { %224 = vmatmul.mubr.msk.f32.vlgmr.msra.gmra.mrb[0].mxu1 %vm38_vm0, %v29_v6  ;;  %35 = vperm.xlu0 %233, %v30_v7   ;;  %p257_p8 = scmp.ne.s32.totalorder %s212_s2, %s256_s29  ;;  %p262_p10 = scmp.lt.s32.totalorder %s256_s29, %s256_s29 }
  0x1a   :  { %p263_p11 = por %p262_p10, %p261_p9 }
  0x1c   :  { %p264_p12 = pnand %p263_p11, %p257_p8 }
  0x97   :  { %v36_v8 = vpop.permute.xlu0 %35 }
  0xea   :  { %v108_v9 = vpop.f32.mrb[0].mxu0 }
  0xeb   :  { %v191_v10 = vpop.f32.mrb[0].mxu1  ;;  %v109_v11 = vadd.f32 %v108_v9, %v36_v8  ;;  %v110_v13 = vpop.f32.mrb[1].mxu0 }
  0xec   :  { %v192_v12 = vadd.f32 %v191_v10, %v36_v8  ;;  %v193_v14 = vpop.f32.mrb[1].mxu1  ;;  %v111_v15 = vadd.f32 %v110_v13, %v36_v8 }
  0xed   :  { %v194_v16 = vadd.f32 %v193_v14, %v36_v8  ;;  %v113_v17 = vmul.f32 0.01, %v109_v11 }
  0xee   :  { %v196_v18 = vmul.f32 0.01, %v192_v12  ;;  %v114_v19 = vmul.f32 0.01, %v111_v15 }
  0xef   :  { %v197_v20 = vmul.f32 0.01, %v194_v16  ;;  %v115_v21 = vmax.f32 %v109_v11, %v113_v17 }
  0xf0   :  { %v198_v22 = vmax.f32 %v192_v12, %v196_v18  ;;  %v116_v23 = vmax.f32 %v111_v15, %v114_v19 }
  0xf1   :  { %v199_v24 = vmax.f32 %v194_v16, %v197_v20 }
  0xf2   :  { %v119_v25 = vcombine.low %v115_v21, %v116_v23 }
  0xf3   :  { %v202_v26 = vcombine.low %v198_v22, %v199_v24 }
  0xf4   :  { %121 = vst [vmem:[#allocation5] sm:$0xff] %v119_v25 }
  0xf5   :  { %205 = vst [vmem:[#allocation5 + $0x8] sm:$0xff] %v202_v26 }
  0xf6   :  { %267 = shalt.err (!%p264_p12)
}
  0xf7   :  { %s268_s5 = scalar_lea.hbm %s343_s3, 256 }
  0xf8   :  { %p269_p13 = scmp.ne.s32.totalorder %s343_s3, %s268_s5  ;;  %p272_p0 = scmp.lt.u32.totalorder %s268_s5, %s343_s3 }
  0xfa   :  { %p274_p1 = pnand %p272_p0, %p269_p13 }
  0xfc   :  { %277 = shalt.err (!%p274_p1)
}
  0xfd   :  { %s288_s10 = smov 128   ;;  %s289_s11 = smov 8  }
  0xfe   :  { %217 = dma.vmem_to_hbm [thread:$0]  %s212_s2, 256, %s343_s3, [#allocation4], %s288_s10, %s288_s10, %s289_s11  }
  0xff   :  { %280 = dma.done.wait [#allocation4], 256  }
 0x100   :  { %281 = vsyncadd [#allocation4], 4294967040 }
 0x101   :  { %221 = vsyncpa [#allocation3], 1 }
 0x102   :  { %222 = vsyncpa [#allocation4], 1 }

</bundles_post_ra>
